<compile_context>
chip_gen: v5e
topology: v5e:2x2
jax: 0.10.0
libtpu: 0.0.40
codegen_flags: <defaults>
</compile_context>

<pallas_src>
import functools

import jax
import jax.numpy as jnp
from jax.experimental import pallas as pl
from jax.experimental.pallas import tpu as pltpu


def _round_up(x, m):
    return ((x + m - 1) // m) * m


# ---------------------------------------------------------------------------
# Fused Pallas kernel: layer 0 + (n_layers - 1) x [relu -> fc] in one body.
# ---------------------------------------------------------------------------
def _ann_fused_kernel(x_ref, w0_ref, b0_ref, w1_ref, b1_ref, o_ref, *, n_layers):
    # Layer 0: x @ W0 + b0  (f32 accumulation on the MXU)
    h = jnp.dot(x_ref[...], w0_ref[...], preferred_element_type=jnp.float32)
    h = h + b0_ref[...]

    if n_layers > 1:
        # Load shared weights/bias once (outside the unrolled layer loop).
        w1 = w1_ref[...]
        b1 = b1_ref[...]
        # TODO(synk): training-mode dropout (pltpu.prng_random_bits mask) not
        # implemented; eval-mode (identity) semantics only.
        for _ in range(n_layers - 1):
            h = jnp.dot(jnp.maximum(h, 0.0), w1,
                        preferred_element_type=jnp.float32) + b1

    o_ref[...] = h.astype(o_ref.dtype)


def _ann_forward_2d(x2d, w0, b0, w1, b1, *, n_layers, tile_n=1024):
    """x2d: (N, input_size) -> (N, reduced_size), all layers fused."""
    n, k = x2d.shape
    m = w0.shape[1]
    itemsize = jnp.dtype(x2d.dtype).itemsize

    # Row tile: multiple of 8, no larger than needed.  tile_n ~ 1024 keeps the
    # double-buffered tiles a few MiB -> safe on v7x's smaller VMEM while still
    # big enough to amortize per-step overhead on v5e/v6e.
    tile = min(tile_n, _round_up(n, 8))
    tile = _round_up(tile, 8)
    n_pad = _round_up(n, tile)
    if n_pad != n:
        x2d = jnp.pad(x2d, ((0, n_pad - n), (0, 0)))

    grid = (n_pad // tile,)

    flops = 2 * n_pad * k * m + 2 * max(n_layers - 1, 0) * n_pad * m * m
    bytes_accessed = itemsize * (
        n_pad * k          # x read
        + k * m + m        # w0, b0
        + m * m + m        # w1, b1
        + n_pad * m        # output write
    )
    cost = pl.CostEstimate(flops=flops, transcendentals=0,
                           bytes_accessed=bytes_accessed)

    out = pl.pallas_call(
        functools.partial(_ann_fused_kernel, n_layers=n_layers),
        out_shape=jax.ShapeDtypeStruct((n_pad, m), x2d.dtype),
        grid_spec=pltpu.PrefetchScalarGridSpec(
            num_scalar_prefetch=0,
            grid=grid,
            in_specs=[
                pl.BlockSpec((tile, k), lambda i: (i, 0)),   # x tile (pipelined)
                pl.BlockSpec((k, m), lambda i: (0, 0)),      # w0 (VMEM-resident)
                pl.BlockSpec((1, m), lambda i: (0, 0)),      # b0
                pl.BlockSpec((m, m), lambda i: (0, 0)),      # w1
                pl.BlockSpec((1, m), lambda i: (0, 0)),      # b1
            ],
            out_specs=pl.BlockSpec((tile, m), lambda i: (i, 0)),
        ),
        compiler_params=pltpu.CompilerParams(
            dimension_semantics=("parallel",),
            vmem_limit_bytes=32 * 1024 * 1024,
        ),
        cost_estimate=cost,
    )(x2d, w0, b0, w1, b1)

    return out[:n]


# ---------------------------------------------------------------------------
# ANN module (parameters initialized deterministically in-script)
# ---------------------------------------------------------------------------
class ANNPallas:
    def __init__(self, input_size=256, reduced_size=128, n_ANNlayers=1, seed=0):
        self.n_ANNlayers = n_ANNlayers
        k = jax.random.PRNGKey(seed)
        k0, k1, k2, k3 = jax.random.split(k, 4)
        # Match nn.Linear default init scale: U(-1/sqrt(fan_in), 1/sqrt(fan_in))
        s0 = 1.0 / jnp.sqrt(input_size)
        s1 = 1.0 / jnp.sqrt(reduced_size)
        # stored as (in, out)
        self.w0 = jax.random.uniform(k0, (input_size, reduced_size), jnp.float32, -s0, s0)
        self.b0 = jax.random.uniform(k1, (1, reduced_size), jnp.float32, -s0, s0)
        self.w1 = jax.random.uniform(k2, (reduced_size, reduced_size), jnp.float32, -s1, s1)
        self.b1 = jax.random.uniform(k3, (1, reduced_size), jnp.float32, -s1, s1)

    @functools.partial(jax.jit, static_argnums=0)
    def __call__(self, x):
        # x: (batch, seq, input_size)  -- flatten leading dims for the matmul
        batch, seq, feat = x.shape
        h = x.reshape(batch * seq, feat)
        h = _ann_forward_2d(h, self.w0, self.b0, self.w1, self.b1,
                            n_layers=self.n_ANNlayers)
        return h.reshape(batch, seq, -1)


# ---------------------------------------------------------------------------
if __name__ == "__main__":
    input_size = 256
    reduced_size = 128

    def ref_forward(model, x, n_layers):
        h = x.reshape(-1, input_size) @ model.w0 + model.b0
        for _ in range(n_layers - 1):
            h = jnp.maximum(h, 0.0) @ model.w1 + model.b1
        return h.reshape(x.shape[0], x.shape[1], reduced_size)

    # Test 1: default single-layer config, N multiple of 8.
    batch, seq = 2, 8
    model1 = ANNPallas(input_size=input_size, reduced_size=reduced_size, n_ANNlayers=1)
    x1 = jax.random.normal(jax.random.PRNGKey(0), (batch, seq, input_size), jnp.float32)
    out1 = jax.block_until_ready(model1(x1))
    ref1 = ref_forward(model1, x1, 1)
    assert out1.shape == (batch, seq, reduced_size)
    assert jnp.allclose(out1, ref1, atol=1e-4, rtol=1e-4)

    # Test 2: fused multi-layer path + ragged N (exercises row padding).
    batch2, seq2 = 3, 5
    model2 = ANNPallas(input_size=input_size, reduced_size=reduced_size, n_ANNlayers=3)
    x2 = jax.random.normal(jax.random.PRNGKey(1), (batch2, seq2, input_size), jnp.float32)
    out2 = jax.block_until_ready(model2(x2))
    ref2 = ref_forward(model2, x2, 3)
    assert out2.shape == (batch2, seq2, reduced_size)
    assert jnp.allclose(out2, ref2, atol=1e-4, rtol=1e-4)

    print("KERNEL_OK")
</pallas_src>

<mosaic_0001>
module attributes {stable_mosaic.version = 11 : i64} {
  func.func @_ann_fused_kernel(%arg0: i32, %arg1: memref<16x256xf32, #tpu.memory_space<vmem>>, %arg2: memref<256x128xf32, #tpu.memory_space<vmem>>, %arg3: memref<1x128xf32, #tpu.memory_space<vmem>>, %arg4: memref<128x128xf32, #tpu.memory_space<vmem>>, %arg5: memref<1x128xf32, #tpu.memory_space<vmem>>, %arg6: memref<16x128xf32, #tpu.memory_space<vmem>>) attributes {dimension_semantics = [#tpu.dimension_semantics<parallel>], iteration_bounds = array<i64: 1>, scalar_prefetch = 0 : i64, scratch_operands = 0 : i64, tpu.core_type = #tpu.core_type<tc>, window_params = [{transform_indices = @transform_0, window_bounds = array<i64: 16, 256>}, {pipeline_mode = #tpu.pipeline_mode<synchronous>, transform_indices = @transform_1, window_bounds = array<i64: 256, 128>}, {pipeline_mode = #tpu.pipeline_mode<synchronous>, transform_indices = @transform_2, window_bounds = array<i64: 1, 128>}, {pipeline_mode = #tpu.pipeline_mode<synchronous>, transform_indices = @transform_3, window_bounds = array<i64: 128, 128>}, {pipeline_mode = #tpu.pipeline_mode<synchronous>, transform_indices = @transform_4, window_bounds = array<i64: 1, 128>}, {transform_indices = @transform_5, window_bounds = array<i64: 16, 128>}]} {
    %c0 = arith.constant 0 : index
    %c0_0 = arith.constant 0 : index
    %0 = vector.load %arg1[%c0, %c0_0] : memref<16x256xf32, #tpu.memory_space<vmem>>, vector<16x256xf32>
    %c0_1 = arith.constant 0 : index
    %c0_2 = arith.constant 0 : index
    %1 = vector.load %arg2[%c0_1, %c0_2] : memref<256x128xf32, #tpu.memory_space<vmem>>, vector<256x128xf32>
    %cst = arith.constant dense<0.000000e+00> : vector<16x128xf32>
    %2 = tpu.matmul %0, %1, %cst {dimension_numbers = #tpu.dot_dimension_numbers<[1], [0], [0], [1], [0, 0, 1, 1], [], []>} : vector<16x256xf32>, vector<256x128xf32>, vector<16x128xf32> -> vector<16x128xf32>
    %c0_3 = arith.constant 0 : index
    %c0_4 = arith.constant 0 : index
    %3 = vector.load %arg3[%c0_3, %c0_4] : memref<1x128xf32, #tpu.memory_space<vmem>>, vector<1x128xf32>
    %4 = vector.broadcast %3 : vector<1x128xf32> to vector<16x128xf32>
    %5 = arith.addf %2, %4 : vector<16x128xf32>
    %c0_5 = arith.constant 0 : index
    %c0_6 = arith.constant 0 : index
    %6 = vector.load %arg6[%c0_5, %c0_6] : memref<16x128xf32, #tpu.memory_space<vmem>>, vector<16x128xf32>
    tpu.vector_store %arg6[%c0_5, %c0_6], %5 {strides = array<i32>} : memref<16x128xf32, #tpu.memory_space<vmem>>, vector<16x128xf32>,
    return
  }
  func.func @transform_0(%arg0: i32) -> (i32, i32) {
    %c0_i32 = arith.constant 0 : i32
    %c0_i32_0 = arith.constant 0 : i32
    return %arg0, %c0_i32 : i32, i32
  }
  func.func @transform_1(%arg0: i32) -> (i32, i32) {
    %c0_i32 = arith.constant 0 : i32
    %c0_i32_0 = arith.constant 0 : i32
    %c0_i32_1 = arith.constant 0 : i32
    return %c0_i32, %c0_i32_0 : i32, i32
  }
  func.func @transform_2(%arg0: i32) -> (i32, i32) {
    %c0_i32 = arith.constant 0 : i32
    %c0_i32_0 = arith.constant 0 : i32
    %c0_i32_1 = arith.constant 0 : i32
    return %c0_i32, %c0_i32_0 : i32, i32
  }
  func.func @transform_3(%arg0: i32) -> (i32, i32) {
    %c0_i32 = arith.constant 0 : i32
    %c0_i32_0 = arith.constant 0 : i32
    %c0_i32_1 = arith.constant 0 : i32
    return %c0_i32, %c0_i32_0 : i32, i32
  }
  func.func @transform_4(%arg0: i32) -> (i32, i32) {
    %c0_i32 = arith.constant 0 : i32
    %c0_i32_0 = arith.constant 0 : i32
    %c0_i32_1 = arith.constant 0 : i32
    return %c0_i32, %c0_i32_0 : i32, i32
  }
  func.func @transform_5(%arg0: i32) -> (i32, i32) {
    %c0_i32 = arith.constant 0 : i32
    %c0_i32_0 = arith.constant 0 : i32
    return %arg0, %c0_i32 : i32, i32
  }
}

</mosaic_0001>

<bundles_post_ra>
// kernel: a_call__.1
= control target key start
LH: loop header
LB: loop body
LE: loop exit
PB: predicated region body
PF: predicated region fallthrough
CT: control target
= control target key end

     0   :  { %10 = vsyncpa [#allocation3], 0  ;;  %s381_s0 = inlined_call_operand.hbm [shape: f32[16,256], index: 0, kind: input, shape index: {}]   ;;  %s382_s1 = inlined_call_operand.hbm [shape: f32[256,128], index: 1, kind: input, shape index: {}]   ;;  %s383_s2 = inlined_call_operand.vmem [shape: f32[1,128], index: 2, kind: input, shape index: {}]   ;;  %s384_s3 = inlined_call_operand.hbm [shape: f32[128,128], index: 3, kind: input, shape index: {}]   ;;  %s385_s4 = inlined_call_operand.vmem [shape: f32[1,128], index: 4, kind: input, shape index: {}]   ;;  %s386_s5 = inlined_call_operand.hbm [shape: f32[16,128], index: 5, kind: output, shape index: {}]  }
   0x1   :  { %11 = vsyncpa [#allocation6], 0  ;;  %s30_s20 = sshll.u32 %s382_s1, 4  ;;  %s31_s20 = int_to_ptr.hbm [resolvable:$true] %s30_s20 }
   0x2   :  { %12 = vsyncpa [#allocation4], 0  ;;  %s319_s21 = smov [#allocation5]   ;;  %s17_s25 = sshll.u32 %s381_s0, 4  ;;  %s18_s25 = int_to_ptr.hbm [resolvable:$true] %s17_s25 }
   0x3   :  { %s32_s22 = sshll.u32 %s319_s21, 4  ;;  %s320_s26 = smov 128   ;;  %s33_s22 = int_to_ptr.vmem [resolvable:$true] %s32_s22 }
   0x4   :  { %s321_s4 = smov 8   ;;  %s322_s27 = smov [#allocation2]  }
   0x5   :  { %38 = dma.hbm_to_vmem [thread:$0]  %s31_s20, 4096, %s33_s22, [#allocation6], %s320_s26, %s320_s26, %s321_s4  }
   0x6   :  { %s19_s28 = sshll.u32 %s322_s27, 4  ;;  %s323_s1 = smov 256   ;;  %s20_s28 = int_to_ptr.vmem [resolvable:$true] %s19_s28 }
   0x7   :  { %s324_s29 = smov 16   ;;  %s45_s7 = sshll.u32 %s384_s3, 4  ;;  %s46_s7 = int_to_ptr.hbm [resolvable:$true] %s45_s7 }
   0x8   :  { %25 = dma.hbm_to_vmem [thread:$0]  %s18_s25, 512, %s20_s28, [#allocation3], %s323_s1, %s323_s1, %s324_s29  }
   0x9   :  { %s325_s8 = smov [#allocation7]  }
   0xa   :  { %s47_s0 = sshll.u32 %s325_s8, 4  ;;  %s48_s0 = int_to_ptr.vmem [resolvable:$true] %s47_s0 }
   0xb   :  { %53 = dma.hbm_to_vmem [thread:$0]  %s46_s7, 2048, %s48_s0, [#allocation6], %s320_s26, %s320_s26, %s321_s4  }
   0xc   :  { %313 = dma.done.wait [#allocation3], 512  }
   0xd   :  { %314 = vsyncadd [#allocation3], 4294966784 }
   0xe   :  { %315 = dma.done.wait [#allocation6], 6144  }
   0xf   :  { %316 = vsyncadd [#allocation6], 4294961152  ;;  %v87_v0 = vld [vmem:[#allocation5 + $0x78] sm:$0xff]  ;;  %v86_v1 = vld [vmem:[#allocation5 + $0x70] sm:$0xff]  ;;  %s326_s10 = smov [#allocation8]   ;;  %s162_s14 = sshll.u32 %s386_s5, 4  ;;  %s163_s14 = int_to_ptr.hbm [resolvable:$true] %s162_s14 }
  0x10   :  { %v103_v2 = vld [vmem:[#allocation5 + $0xf8] sm:$0xff]  ;;  %176 = vmatpush.msra.mxu2 %v87_v0  ;;  %v102_v3 = vld [vmem:[#allocation5 + $0xf0] sm:$0xff]  ;;  %v85_v4 = vld [vmem:[#allocation5 + $0x68] sm:$0xff]  ;;  %108 = vmatpush.msra.mxu0 %v87_v0  ;;  %s160_s11 = sshll.u32 %s326_s10, 4  ;;  %s161_s11 = int_to_ptr.vmem [resolvable:$true] %s160_s11 }
  0x11   :  { %192 = vmatpush.msra.mxu3 %v103_v2  ;;  %v101_v5 = vld [vmem:[#allocation5 + $0xe8] sm:$0xff]  ;;  %131 = vmatpush.msra.mxu1 %v103_v2  ;;  %v84_v6 = vld [vmem:[#allocation5 + $0x60] sm:$0xff]  ;;  %v83_v8 = vld [vmem:[#allocation5 + $0x58] sm:$0xff] }
  0x12   :  { %177 = vmatpush.msra.mxu2 %v86_v1  ;;  %109 = vmatpush.msra.mxu0 %v86_v1  ;;  %v100_v7 = vld [vmem:[#allocation5 + $0xe0] sm:$0xff]  ;;  %v99_v9 = vld [vmem:[#allocation5 + $0xd8] sm:$0xff]  ;;  %v82_v10 = vld [vmem:[#allocation5 + $0x50] sm:$0xff] }
  0x13   :  { %193 = vmatpush.msra.mxu3 %v102_v3  ;;  %132 = vmatpush.msra.mxu1 %v102_v3  ;;  %v98_v11 = vld [vmem:[#allocation5 + $0xd0] sm:$0xff]  ;;  %v81_v12 = vld [vmem:[#allocation5 + $0x48] sm:$0xff]  ;;  %v80_v14 = vld [vmem:[#allocation5 + $0x40] sm:$0xff] }
  0x14   :  { %178 = vmatpush.msra.mxu2 %v85_v4  ;;  %110 = vmatpush.msra.mxu0 %v85_v4  ;;  %v97_v13 = vld [vmem:[#allocation5 + $0xc8] sm:$0xff]  ;;  %v96_v15 = vld [vmem:[#allocation5 + $0xc0] sm:$0xff]  ;;  %v79_v16 = vld [vmem:[#allocation5 + $0x38] sm:$0xff] }
  0x15   :  { %194 = vmatpush.msra.mxu3 %v101_v5  ;;  %133 = vmatpush.msra.mxu1 %v101_v5  ;;  %v95_v17 = vld [vmem:[#allocation5 + $0xb8] sm:$0xff]  ;;  %v78_v18 = vld [vmem:[#allocation5 + $0x30] sm:$0xff]  ;;  %v77_v20 = vld [vmem:[#allocation5 + $0x28] sm:$0xff] }
  0x16   :  { %179 = vmatpush.msra.mxu2 %v84_v6  ;;  %111 = vmatpush.msra.mxu0 %v84_v6  ;;  %v94_v19 = vld [vmem:[#allocation5 + $0xb0] sm:$0xff]  ;;  %v93_v21 = vld [vmem:[#allocation5 + $0xa8] sm:$0xff]  ;;  %v76_v22 = vld [vmem:[#allocation5 + $0x20] sm:$0xff] }
  0x17   :  { %195 = vmatpush.msra.mxu3 %v100_v7  ;;  %134 = vmatpush.msra.mxu1 %v100_v7  ;;  %v92_v23 = vld [vmem:[#allocation5 + $0xa0] sm:$0xff]  ;;  %v75_v24 = vld [vmem:[#allocation5 + $0x18] sm:$0xff]  ;;  %v74_v26 = vld [vmem:[#allocation5 + $0x10] sm:$0xff] }
  0x18   :  { %180 = vmatpush.msra.mxu2 %v83_v8  ;;  %112 = vmatpush.msra.mxu0 %v83_v8  ;;  %v91_v25 = vld [vmem:[#allocation5 + $0x98] sm:$0xff]  ;;  %v90_v27 = vld [vmem:[#allocation5 + $0x90] sm:$0xff]  ;;  %v73_v28 = vld [vmem:[#allocation5 + $0x8] sm:$0xff] }
  0x19   :  { %196 = vmatpush.msra.mxu3 %v99_v9  ;;  %135 = vmatpush.msra.mxu1 %v99_v9  ;;  %v89_v29 = vld [vmem:[#allocation5 + $0x88] sm:$0xff]  ;;  %v72_v30 = vld [vmem:[#allocation5] sm:$0xff]  ;;  %v70_v32 = vld [vmem:[#allocation2 + $0x10] sm:$0xff] }
  0x1a   :  { %181 = vmatpush.msra.mxu2 %v82_v10  ;;  %113 = vmatpush.msra.mxu0 %v82_v10  ;;  %v88_v31 = vld [vmem:[#allocation5 + $0x80] sm:$0xff]  ;;  %v71_v33 = vld [vmem:[#allocation2 + $0x18] sm:$0xff]  ;;  %v69_v35 = vld [vmem:[#allocation2 + $0x8] sm:$0xff] }
  0x1b   :  { %197 = vmatpush.msra.mxu3 %v98_v11  ;;  %136 = vmatpush.msra.mxu1 %v98_v11  ;;  %v68_v34 = vld [vmem:[#allocation2] sm:$0xff] }
  0x1c   :  { %182 = vmatpush.msra.mxu2 %v81_v12  ;;  %114 = vmatpush.msra.mxu0 %v81_v12  ;;  %v216_v36 = vld [vmem:[%s383_s2] ss:$0 sm:$0xff] }
  0x1d   :  { %198 = vmatpush.msra.mxu3 %v97_v13  ;;  %137 = vmatpush.msra.mxu1 %v97_v13 }
  0x1e   :  { %183 = vmatpush.msra.mxu2 %v80_v14  ;;  %115 = vmatpush.msra.mxu0 %v80_v14 }
  0x1f   :  { %199 = vmatpush.msra.mxu3 %v96_v15  ;;  %138 = vmatpush.msra.mxu1 %v96_v15 }
  0x20   :  { %184 = vmatpush.msra.mxu2 %v79_v16  ;;  %116 = vmatpush.msra.mxu0 %v79_v16 }
  0x21   :  { %200 = vmatpush.msra.mxu3 %v95_v17  ;;  %139 = vmatpush.msra.mxu1 %v95_v17 }
  0x22   :  { %185 = vmatpush.msra.mxu2 %v78_v18  ;;  %117 = vmatpush.msra.mxu0 %v78_v18 }
  0x23   :  { %201 = vmatpush.msra.mxu3 %v94_v19  ;;  %140 = vmatpush.msra.mxu1 %v94_v19 }
  0x24   :  { %186 = vmatpush.msra.mxu2 %v77_v20  ;;  %118 = vmatpush.msra.mxu0 %v77_v20 }
  0x25   :  { %202 = vmatpush.msra.mxu3 %v93_v21  ;;  %141 = vmatpush.msra.mxu1 %v93_v21 }
  0x26   :  { %187 = vmatpush.msra.mxu2 %v76_v22  ;;  %119 = vmatpush.msra.mxu0 %v76_v22 }
  0x27   :  { %203 = vmatpush.msra.mxu3 %v92_v23  ;;  %142 = vmatpush.msra.mxu1 %v92_v23 }
  0x28   :  { %188 = vmatpush.msra.mxu2 %v75_v24  ;;  %120 = vmatpush.msra.mxu0 %v75_v24 }
  0x29   :  { %204 = vmatpush.msra.mxu3 %v91_v25  ;;  %143 = vmatpush.msra.mxu1 %v91_v25 }
  0x2a   :  { %189 = vmatpush.msra.mxu2 %v74_v26  ;;  %121 = vmatpush.msra.mxu0 %v74_v26 }
  0x2b   :  { %205 = vmatpush.msra.mxu3 %v90_v27  ;;  %144 = vmatpush.msra.mxu1 %v90_v27 }
  0x2c   :  { %190 = vmatpush.msra.mxu2 %v73_v28  ;;  %122 = vmatpush.msra.mxu0 %v73_v28 }
  0x2d   :  { %206 = vmatpush.msra.mxu3 %v89_v29  ;;  %145 = vmatpush.msra.mxu1 %v89_v29 }
  0x2e   :  { %191 = vmatpush.msra.mxu2 %v72_v30  ;;  %123 = vmatpush.msra.mxu0 %v72_v30 }
  0x2f   :  { %207 = vmatpush.msra.mxu3 %v88_v31  ;;  %127 = vmatmul.f32.vlgmr.msra.gmra.mxu2 %v70_v32 }
  0x30   :  { %150 = vmatmul.f32.vlgmr.msra.gmra.mxu3 %v71_v33  ;;  %146 = vmatpush.msra.mxu1 %v88_v31 }
  0x31   :  { %124 = vmatmul.f32.vlgmr.msra.gmra.mxu0 %v68_v34  ;;  %147 = vmatmul.f32.vlgmr.msra.gmra.mxu1 %v69_v35 }
  0xae   :  { %v125_v37 = vpop.f32.mrf.mxu0  ;;  %v148_v38 = vpop.f32.mrf.mxu1 }
  0xaf   :  { %v126_v39 = vadd.f32 %v216_v36, %v125_v37 }
  0xb1   :  { %v149_v40 = vadd.f32 %v148_v38, %v126_v39 }
  0xb2   :  { %v128_v41 = vpop.f32.mrf.mxu2 }
  0xb3   :  { %v151_v42 = vpop.f32.mrf.mxu3  ;;  %v129_v43 = vadd.f32 %v216_v36, %v128_v41  ;;  %154 = vst [vmem:[#allocation8] sm:$0xff] %v149_v40 }
  0xb5   :  { %v152_v44 = vadd.f32 %v151_v42, %v129_v43 }
  0xb7   :  { %155 = vst [vmem:[#allocation8 + $0x8] sm:$0xff] %v152_v44 }
  0xb8   :  { %168 = dma.vmem_to_hbm [thread:$0]  %s161_s11, 256, %s163_s14, [#allocation4], %s320_s26, %s320_s26, %s321_s4  }
  0xb9   :  { %317 = dma.done.wait [#allocation4], 256  }
  0xba   :  { %318 = vsyncadd [#allocation4], 4294967040 }
  0xbb   :  { %173 = vsyncpa [#allocation3], 1 }
  0xbc   :  { %174 = vsyncpa [#allocation6], 1 }
  0xbd   :  { %175 = vsyncpa [#allocation4], 1 }

</bundles_post_ra>
